<compile_context>
chip_gen: v5e
topology: v5e:2x2
jax: 0.10.0
libtpu: 0.0.40
codegen_flags: <defaults>
</compile_context>

<pallas_src>
import jax
import jax.numpy as jnp
from jax.experimental import pallas as pl
from jax.experimental.pallas import tpu as pltpu


def _round_up(v, m):
    return -(-v // m) * m


def _make_mlp_kernel(n_layers, n_streams):
    """Fused MLP: (Linear -> ReLU)*(n_layers-1) -> Linear, applied to each stream."""

    def kernel(*refs):
        in_refs = refs[:n_streams]
        param_refs = refs[n_streams:n_streams + 2 * n_layers]
        out_refs = refs[n_streams + 2 * n_layers:]
        # Hoist the (tiny) weight/bias loads so each is read from VMEM once per step.
        ws = [param_refs[2 * i][...] for i in range(n_layers)]
        bs = [param_refs[2 * i + 1][...] for i in range(n_layers)]
        for s in range(n_streams):
            h = in_refs[s][...]                                  # (tile_m, C_in) f32
            for i in range(n_layers):
                h = jnp.dot(h, ws[i], preferred_element_type=jnp.float32) + bs[i]
                if i < n_layers - 1:
                    h = jnp.maximum(h, 0.0)                      # ReLU on hidden layers only
            out_refs[s][...] = h.astype(out_refs[s].dtype)

    return kernel


def _choose_tile_m(n_rows, in_dim, out_dim, n_streams, params_bytes, max_tile=2048):
    """Largest row tile (multiple of 8) that fits a conservative VMEM budget.

    Budget is 12 MiB: well under the scoped-VMEM default on v5e/v6e (16/32 MiB
    of 128 MiB) and v7x (32 MiB of 64 MiB), so no vmem_limit_bytes override is
    needed.  Single grid step whenever all rows fit in one tile (forcing extra
    steps only adds DMA + per-step overhead on 1-TC parts).
    """
    vmem_budget = 12 * 1024 * 1024
    # Double-buffered input + output tiles per stream, f32.
    bytes_per_row = 2 * n_streams * (in_dim + out_dim) * 4
    budget_rows = max(8, (vmem_budget - 2 * params_bytes) // bytes_per_row)
    tile = max(8, min(max_tile, (budget_rows // 8) * 8))
    if n_rows <= tile:
        tile = max(8, _round_up(n_rows, 8))
    return tile


def mlp_pallas_multi(xs, params, *, max_tile_m=2048):
    """Apply the MLP to each array in `xs` (all (N, in_dim)) in ONE pallas_call.

    params: list of (W, b) with W: (C_in, C_out), b: (1, C_out).
    Returns a tuple of (N, out_dim) arrays, one per input.
    """
    n, in_dim = xs[0].shape
    n_streams = len(xs)
    n_layers = len(params)
    out_dim = params[-1][0].shape[1]
    params_bytes = sum(int(w.size) + int(b.size) for (w, b) in params) * 4

    # --- Row tiling -----------------------------------------------------------
    tile_m = _choose_tile_m(n, in_dim, out_dim, n_streams, params_bytes, max_tile_m)
    n_blocks = pl.cdiv(n, tile_m)
    if n_blocks > 1 and n_blocks % 2:
        # v7x megacore: even block count so both TensorCores get equal work along
        # the "parallel" row axis; shrink the tile so row padding stays minimal.
        # Harmless on 1-TC v5e/v6e.
        n_blocks += 1
        tile_m = _round_up(pl.cdiv(n, n_blocks), 8)
    n_pad = n_blocks * tile_m
    if n_pad != n:
        xs = tuple(jnp.pad(x, ((0, n_pad - n), (0, 0))) for x in xs)

    kernel = _make_mlp_kernel(n_layers, n_streams)

    # Input rows tiled along the grid; weights/biases loaded whole each step
    # (constant block index (0, 0) -> same resident tile across the grid).
    row_spec = pl.BlockSpec((tile_m, in_dim), lambda i: (i, 0))
    in_specs = [row_spec] * n_streams
    flat_params = []
    for (w, b) in params:
        in_specs.append(pl.BlockSpec(w.shape, lambda i: (0, 0)))
        in_specs.append(pl.BlockSpec(b.shape, lambda i: (0, 0)))
        flat_params.extend([w, b])

    # Unpadded output: out_dim equals the full array dim so the block is legal;
    # this keeps HBM writeback at the real data size (16x less than a 128-pad).
    out_spec = pl.BlockSpec((tile_m, out_dim), lambda i: (i, 0))
    out_shape = tuple(jax.ShapeDtypeStruct((n_pad, out_dim), x.dtype) for x in xs)

    outs = pl.pallas_call(
        kernel,
        out_shape=out_shape,
        grid_spec=pltpu.PrefetchScalarGridSpec(
            num_scalar_prefetch=0,
            grid=(n_blocks,),
            in_specs=in_specs,
            out_specs=[out_spec] * n_streams,
        ),
        compiler_params=pltpu.CompilerParams(
            dimension_semantics=("parallel",),
        ),
    )(*xs, *flat_params)

    outs = tuple(outs)
    if n_pad != n:
        outs = tuple(o[:n] for o in outs)
    return outs


def init_linear_params(key, in_dim, out_dim, hidden_list):
    """Deterministic PyTorch-style (Kaiming-uniform-ish) init for the MLP."""
    params = []
    lastv = in_dim
    dims = list(hidden_list) + [out_dim]
    for d in dims:
        key, kw, kb = jax.random.split(key, 3)
        bound = 1.0 / jnp.sqrt(lastv)
        # Stored as (C_in, C_out) == transpose of torch's (out, in) weight.
        w = jax.random.uniform(kw, (lastv, d), jnp.float32, -bound, bound)
        b = jax.random.uniform(kb, (1, d), jnp.float32, -bound, bound)
        params.append((w, b))
        lastv = d
    return params


def nlayer_discriminator_forward(src_gen, tgt_gen, params):
    """Matches NLayerDiscriminator.forward semantics.

    When src/tgt have the same flattened row count (the usual case) both go
    through a single pallas_call as two streams (no concat copy); otherwise we
    fall back to two calls (weights are tiny, the duplicated DMA is negligible).
    """
    dim = src_gen.shape[1]
    x = src_gen.reshape(-1, dim)
    y = tgt_gen.reshape(-1, dim)
    if x.shape == y.shape:
        out_x, out_y = mlp_pallas_multi((x, y), params)
    else:
        (out_x,) = mlp_pallas_multi((x,), params)
        (out_y,) = mlp_pallas_multi((y,), params)
    return out_x[..., None], out_y[..., None]  # unsqueeze(-1)


def _reference_forward(src_gen, tgt_gen, params):
    """Plain-JAX reference for correctness checking."""
    dim = src_gen.shape[1]

    def mlp(a):
        h = a.reshape(-1, dim).astype(jnp.float32)
        for i, (w, b) in enumerate(params):
            h = h @ w + b
            if i < len(params) - 1:
                h = jnp.maximum(h, 0.0)
        return h

    return mlp(src_gen)[..., None], mlp(tgt_gen)[..., None]


if __name__ == "__main__":
    # Small, module-consistent shapes: inputs are (N, in_dim) feature batches.
    in_dim = 32
    out_dim = 8
    hidden_list = [64, 64]
    n_rows = 64

    key = jax.random.PRNGKey(0)
    k_src, k_tgt, k_params = jax.random.split(key, 3)

    src_gen = jax.random.normal(k_src, (n_rows, in_dim), jnp.float32)
    tgt_gen = jax.random.normal(k_tgt, (n_rows, in_dim), jnp.float32)

    params = init_linear_params(k_params, in_dim, out_dim, hidden_list)

    out_src, out_tgt = nlayer_discriminator_forward(src_gen, tgt_gen, params)
    out_src = jax.block_until_ready(out_src)
    out_tgt = jax.block_until_ready(out_tgt)

    ref_src, ref_tgt = _reference_forward(src_gen, tgt_gen, params)

    assert out_src.shape == (n_rows, out_dim, 1), out_src.shape
    assert out_tgt.shape == (n_rows, out_dim, 1), out_tgt.shape
    assert jnp.allclose(out_src, ref_src, atol=1e-5, rtol=1e-5)
    assert jnp.allclose(out_tgt, ref_tgt, atol=1e-5, rtol=1e-5)

    print("KERNEL_OK")
</pallas_src>

<mosaic_0001>
module attributes {stable_mosaic.version = 11 : i64} {
  func.func @kernel(%arg0: i32, %arg1: memref<64x32xf32, #tpu.memory_space<vmem>>, %arg2: memref<64x32xf32, #tpu.memory_space<vmem>>, %arg3: memref<32x64xf32, #tpu.memory_space<vmem>>, %arg4: memref<1x64xf32, #tpu.memory_space<vmem>>, %arg5: memref<64x64xf32, #tpu.memory_space<vmem>>, %arg6: memref<1x64xf32, #tpu.memory_space<vmem>>, %arg7: memref<64x8xf32, #tpu.memory_space<vmem>>, %arg8: memref<1x8xf32, #tpu.memory_space<vmem>>, %arg9: memref<64x8xf32, #tpu.memory_space<vmem>>, %arg10: memref<64x8xf32, #tpu.memory_space<vmem>>) attributes {dimension_semantics = [#tpu.dimension_semantics<parallel>], iteration_bounds = array<i64: 1>, scalar_prefetch = 0 : i64, scratch_operands = 0 : i64, tpu.core_type = #tpu.core_type<tc>, window_params = [{transform_indices = @transform_0, window_bounds = array<i64: 64, 32>}, {transform_indices = @transform_1, window_bounds = array<i64: 64, 32>}, {pipeline_mode = #tpu.pipeline_mode<synchronous>, transform_indices = @transform_2, window_bounds = array<i64: 32, 64>}, {pipeline_mode = #tpu.pipeline_mode<synchronous>, transform_indices = @transform_3, window_bounds = array<i64: 1, 64>}, {pipeline_mode = #tpu.pipeline_mode<synchronous>, transform_indices = @transform_4, window_bounds = array<i64: 64, 64>}, {pipeline_mode = #tpu.pipeline_mode<synchronous>, transform_indices = @transform_5, window_bounds = array<i64: 1, 64>}, {pipeline_mode = #tpu.pipeline_mode<synchronous>, transform_indices = @transform_6, window_bounds = array<i64: 64, 8>}, {pipeline_mode = #tpu.pipeline_mode<synchronous>, transform_indices = @transform_7, window_bounds = array<i64: 1, 8>}, {transform_indices = @transform_8, window_bounds = array<i64: 64, 8>}, {transform_indices = @transform_9, window_bounds = array<i64: 64, 8>}]} {
    %c0 = arith.constant 0 : index
    %c0_0 = arith.constant 0 : index
    %0 = vector.load %arg3[%c0, %c0_0] : memref<32x64xf32, #tpu.memory_space<vmem>>, vector<32x64xf32>
    %c0_1 = arith.constant 0 : index
    %c0_2 = arith.constant 0 : index
    %1 = vector.load %arg5[%c0_1, %c0_2] : memref<64x64xf32, #tpu.memory_space<vmem>>, vector<64x64xf32>
    %c0_3 = arith.constant 0 : index
    %c0_4 = arith.constant 0 : index
    %2 = vector.load %arg7[%c0_3, %c0_4] : memref<64x8xf32, #tpu.memory_space<vmem>>, vector<64x8xf32>
    %c0_5 = arith.constant 0 : index
    %c0_6 = arith.constant 0 : index
    %3 = vector.load %arg4[%c0_5, %c0_6] : memref<1x64xf32, #tpu.memory_space<vmem>>, vector<1x64xf32>
    %c0_7 = arith.constant 0 : index
    %c0_8 = arith.constant 0 : index
    %4 = vector.load %arg6[%c0_7, %c0_8] : memref<1x64xf32, #tpu.memory_space<vmem>>, vector<1x64xf32>
    %c0_9 = arith.constant 0 : index
    %c0_10 = arith.constant 0 : index
    %5 = vector.load %arg8[%c0_9, %c0_10] : memref<1x8xf32, #tpu.memory_space<vmem>>, vector<1x8xf32>
    %c0_11 = arith.constant 0 : index
    %c0_12 = arith.constant 0 : index
    %6 = vector.load %arg1[%c0_11, %c0_12] : memref<64x32xf32, #tpu.memory_space<vmem>>, vector<64x32xf32>
    %cst = arith.constant dense<0.000000e+00> : vector<64x64xf32>
    %7 = tpu.matmul %6, %0, %cst {dimension_numbers = #tpu.dot_dimension_numbers<[1], [0], [0], [1], [0, 0, 1, 1], [], []>} : vector<64x32xf32>, vector<32x64xf32>, vector<64x64xf32> -> vector<64x64xf32>
    %8 = vector.broadcast %3 : vector<1x64xf32> to vector<64x64xf32>
    %9 = arith.addf %7, %8 : vector<64x64xf32>
    %cst_13 = arith.constant 0.000000e+00 : f32
    %10 = vector.broadcast %cst_13 : f32 to vector<64x64xf32>
    %11 = arith.maximumf %9, %10 : vector<64x64xf32>
    %cst_14 = arith.constant dense<0.000000e+00> : vector<64x64xf32>
    %12 = tpu.matmul %11, %1, %cst_14 {dimension_numbers = #tpu.dot_dimension_numbers<[1], [0], [0], [1], [0, 0, 1, 1], [], []>} : vector<64x64xf32>, vector<64x64xf32>, vector<64x64xf32> -> vector<64x64xf32>
    %13 = vector.broadcast %4 : vector<1x64xf32> to vector<64x64xf32>
    %14 = arith.addf %12, %13 : vector<64x64xf32>
    %cst_15 = arith.constant 0.000000e+00 : f32
    %15 = vector.broadcast %cst_15 : f32 to vector<64x64xf32>
    %16 = arith.maximumf %14, %15 : vector<64x64xf32>
    %cst_16 = arith.constant dense<0.000000e+00> : vector<64x8xf32>
    %17 = tpu.matmul %16, %2, %cst_16 {dimension_numbers = #tpu.dot_dimension_numbers<[1], [0], [0], [1], [0, 0, 1, 1], [], []>} : vector<64x64xf32>, vector<64x8xf32>, vector<64x8xf32> -> vector<64x8xf32>
    %18 = vector.broadcast %5 : vector<1x8xf32> to vector<64x8xf32>
    %19 = arith.addf %17, %18 : vector<64x8xf32>
    %c0_17 = arith.constant 0 : index
    %c0_18 = arith.constant 0 : index
    %20 = vector.load %arg9[%c0_17, %c0_18] : memref<64x8xf32, #tpu.memory_space<vmem>>, vector<64x8xf32>
    tpu.vector_store %arg9[%c0_17, %c0_18], %19 {strides = array<i32>} : memref<64x8xf32, #tpu.memory_space<vmem>>, vector<64x8xf32>,
    %c0_19 = arith.constant 0 : index
    %c0_20 = arith.constant 0 : index
    %21 = vector.load %arg2[%c0_19, %c0_20] : memref<64x32xf32, #tpu.memory_space<vmem>>, vector<64x32xf32>
    %cst_21 = arith.constant dense<0.000000e+00> : vector<64x64xf32>
    %22 = tpu.matmul %21, %0, %cst_21 {dimension_numbers = #tpu.dot_dimension_numbers<[1], [0], [0], [1], [0, 0, 1, 1], [], []>} : vector<64x32xf32>, vector<32x64xf32>, vector<64x64xf32> -> vector<64x64xf32>
    %23 = vector.broadcast %3 : vector<1x64xf32> to vector<64x64xf32>
    %24 = arith.addf %22, %23 : vector<64x64xf32>
    %cst_22 = arith.constant 0.000000e+00 : f32
    %25 = vector.broadcast %cst_22 : f32 to vector<64x64xf32>
    %26 = arith.maximumf %24, %25 : vector<64x64xf32>
    %cst_23 = arith.constant dense<0.000000e+00> : vector<64x64xf32>
    %27 = tpu.matmul %26, %1, %cst_23 {dimension_numbers = #tpu.dot_dimension_numbers<[1], [0], [0], [1], [0, 0, 1, 1], [], []>} : vector<64x64xf32>, vector<64x64xf32>, vector<64x64xf32> -> vector<64x64xf32>
    %28 = vector.broadcast %4 : vector<1x64xf32> to vector<64x64xf32>
    %29 = arith.addf %27, %28 : vector<64x64xf32>
    %cst_24 = arith.constant 0.000000e+00 : f32
    %30 = vector.broadcast %cst_24 : f32 to vector<64x64xf32>
    %31 = arith.maximumf %29, %30 : vector<64x64xf32>
    %cst_25 = arith.constant dense<0.000000e+00> : vector<64x8xf32>
    %32 = tpu.matmul %31, %2, %cst_25 {dimension_numbers = #tpu.dot_dimension_numbers<[1], [0], [0], [1], [0, 0, 1, 1], [], []>} : vector<64x64xf32>, vector<64x8xf32>, vector<64x8xf32> -> vector<64x8xf32>
    %33 = vector.broadcast %5 : vector<1x8xf32> to vector<64x8xf32>
    %34 = arith.addf %32, %33 : vector<64x8xf32>
    %c0_26 = arith.constant 0 : index
    %c0_27 = arith.constant 0 : index
    %35 = vector.load %arg10[%c0_26, %c0_27] : memref<64x8xf32, #tpu.memory_space<vmem>>, vector<64x8xf32>
    tpu.vector_store %arg10[%c0_26, %c0_27], %34 {strides = array<i32>} : memref<64x8xf32, #tpu.memory_space<vmem>>, vector<64x8xf32>,
    return
  }
  func.func @transform_0(%arg0: i32) -> (i32, i32) {
    %c0_i32 = arith.constant 0 : i32
    %c0_i32_0 = arith.constant 0 : i32
    return %arg0, %c0_i32 : i32, i32
  }
  func.func @transform_1(%arg0: i32) -> (i32, i32) {
    %c0_i32 = arith.constant 0 : i32
    %c0_i32_0 = arith.constant 0 : i32
    return %arg0, %c0_i32 : i32, i32
  }
  func.func @transform_2(%arg0: i32) -> (i32, i32) {
    %c0_i32 = arith.constant 0 : i32
    %c0_i32_0 = arith.constant 0 : i32
    %c0_i32_1 = arith.constant 0 : i32
    return %c0_i32, %c0_i32_0 : i32, i32
  }
  func.func @transform_3(%arg0: i32) -> (i32, i32) {
    %c0_i32 = arith.constant 0 : i32
    %c0_i32_0 = arith.constant 0 : i32
    %c0_i32_1 = arith.constant 0 : i32
    return %c0_i32, %c0_i32_0 : i32, i32
  }
  func.func @transform_4(%arg0: i32) -> (i32, i32) {
    %c0_i32 = arith.constant 0 : i32
    %c0_i32_0 = arith.constant 0 : i32
    %c0_i32_1 = arith.constant 0 : i32
    return %c0_i32, %c0_i32_0 : i32, i32
  }
  func.func @transform_5(%arg0: i32) -> (i32, i32) {
    %c0_i32 = arith.constant 0 : i32
    %c0_i32_0 = arith.constant 0 : i32
    %c0_i32_1 = arith.constant 0 : i32
    return %c0_i32, %c0_i32_0 : i32, i32
  }
  func.func @transform_6(%arg0: i32) -> (i32, i32) {
    %c0_i32 = arith.constant 0 : i32
    %c0_i32_0 = arith.constant 0 : i32
    %c0_i32_1 = arith.constant 0 : i32
    return %c0_i32, %c0_i32_0 : i32, i32
  }
  func.func @transform_7(%arg0: i32) -> (i32, i32) {
    %c0_i32 = arith.constant 0 : i32
    %c0_i32_0 = arith.constant 0 : i32
    %c0_i32_1 = arith.constant 0 : i32
    return %c0_i32, %c0_i32_0 : i32, i32
  }
  func.func @transform_8(%arg0: i32) -> (i32, i32) {
    %c0_i32 = arith.constant 0 : i32
    %c0_i32_0 = arith.constant 0 : i32
    return %arg0, %c0_i32 : i32, i32
  }
  func.func @transform_9(%arg0: i32) -> (i32, i32) {
    %c0_i32 = arith.constant 0 : i32
    %c0_i32_0 = arith.constant 0 : i32
    return %arg0, %c0_i32 : i32, i32
  }
}

</mosaic_0001>

<bundles_post_ra>
// kernel: tpu_custom_call.1
= control target key start
LH: loop header
LB: loop body
LE: loop exit
PB: predicated region body
PF: predicated region fallthrough
CT: control target
= control target key end

     0   :  { %vm65_vm0 = vcmask 261120   ;;  %vm142_vm1 = vcmask 523264   ;;  %vm284_vm2 = vcmask 64512   ;;  %s944_s2 = inlined_call_operand.vmem [shape: f32[32,64], index: 2, kind: input, shape index: {}]   ;;  %s945_s0 = inlined_call_operand.vmem [shape: f32[64,32], index: 0, kind: input, shape index: {}]   ;;  %s946_s3 = inlined_call_operand.vmem [shape: f32[1,64], index: 3, kind: input, shape index: {}]   ;;  %s947_s4 = inlined_call_operand.vmem [shape: f32[64,64], index: 4, kind: input, shape index: {}]   ;;  %s948_s5 = inlined_call_operand.vmem [shape: f32[1,64], index: 5, kind: input, shape index: {}]   ;;  %s949_s6 = inlined_call_operand.vmem [shape: f32[64,8], index: 6, kind: input, shape index: {}]   ;;  %s950_s7 = inlined_call_operand.vmem [shape: f32[1,8], index: 7, kind: input, shape index: {}]   ;;  %s951_s1 = inlined_call_operand.vmem [shape: f32[64,32], index: 1, kind: input, shape index: {}]   ;;  %s952_s8 = inlined_call_operand.vmem [shape: f32[64,8], index: 8, kind: output, shape index: {0}]   ;;  %s953_s9 = inlined_call_operand.vmem [shape: f32[64,8], index: 9, kind: output, shape index: {1}]  }
   0x1   :  { %v640_v0 = vld [vmem:[%s944_s2 + $0x18] sm:$0xff]  ;;  %v645_v1 = vld [vmem:[%s944_s2 + $0x10] sm:$0xff]  ;;  %v652_v2 = vld [vmem:[%s944_s2 + $0x8] sm:$0xff] }
   0x2   :  { %102 = vmatpush.msra.mxu0 %v640_v0  ;;  %576 = vmatpush.msra.mxu1 %v640_v0  ;;  %v660_v3 = vld [vmem:[%s944_s2] sm:$0xff]  ;;  %v59_v5 = vld [vmem:[%s945_s0 + $0x28] sm:$0xff]  ;;  %v42_v6 = vld [vmem:[%s947_s4 + $0x38] sm:$0xff] }
   0x3   :  { %580 = vmatpush.msra.mxu3 %v640_v0  ;;  %v54_v4 = vld [vmem:[%s945_s0] sm:$0xff]  ;;  %v41_v7 = vld [vmem:[%s947_s4 + $0x30] sm:$0xff]  ;;  %v40_v8 = vld [vmem:[%s947_s4 + $0x28] sm:$0xff] }
   0x4   :  { %103 = vmatpush.msra.mxu0 %v645_v1  ;;  %577 = vmatpush.msra.mxu1 %v645_v1  ;;  %v55_v9 = vld [vmem:[%s945_s0 + $0x8] sm:$0xff]  ;;  %v39_v10 = vld [vmem:[%s947_s4 + $0x20] sm:$0xff]  ;;  %v60_v11 = vld [vmem:[%s945_s0 + $0x30] sm:$0xff] }
   0x5   :  { %581 = vmatpush.msra.mxu3 %v645_v1  ;;  %v38_v12 = vld [vmem:[%s947_s4 + $0x18] sm:$0xff]  ;;  %v37_v13 = vld [vmem:[%s947_s4 + $0x10] sm:$0xff]  ;;  %v36_v14 = vld [vmem:[%s947_s4 + $0x8] sm:$0xff] }
   0x6   :  { %104 = vmatpush.msra.mxu0 %v652_v2  ;;  %578 = vmatpush.msra.mxu1 %v652_v2  ;;  %v56_v15 = vld [vmem:[%s945_s0 + $0x10] sm:$0xff]  ;;  %v61_v16 = vld [vmem:[%s945_s0 + $0x38] sm:$0xff]  ;;  %v58_v18 = vld [vmem:[%s945_s0 + $0x20] sm:$0xff] }
   0x7   :  { %582 = vmatpush.msra.mxu3 %v652_v2  ;;  %v57_v17 = vld [vmem:[%s945_s0 + $0x18] sm:$0xff]  ;;  %v35_v19 = vld [vmem:[%s947_s4] sm:$0xff]  ;;  %v49_v34 = vld [vmem:[%s949_s6 + $0x30] sm:$0xff] }
   0x8   :  { %105 = vmatpush.msra.mxu0 %v660_v3  ;;  %579 = vmatpush.msra.mxu1 %v660_v3  ;;  %v728_v20 = vld [vmem:[%s946_s3] ss:$0 sm:$0xff]  ;;  %v50_v33 = vld [vmem:[%s949_s6 + $0x38] sm:$0xff]  ;;  %v48_v36 = vld [vmem:[%s949_s6 + $0x28] sm:$0xff] }
   0x9   :  { %528 = vmatmul.msk.f32.vlgmr.msra.gmra.mxu0 %vm65_vm0, %v54_v4  ;;  %583 = vmatpush.msra.mxu3 %v660_v3  ;;  %v47_v39 = vld [vmem:[%s949_s6 + $0x20] sm:$0xff]  ;;  %v46_v41 = vld [vmem:[%s949_s6 + $0x18] sm:$0xff]  ;;  %v45_v50 = vld [vmem:[%s949_s6 + $0x10] sm:$0xff] }
   0xa   :  { %533 = vmatmul.msk.f32.vlgmr.msra.gmra.mxu1 %vm65_vm0, %v59_v5  ;;  %406 = vmatpush.msrb.mxu0 %v42_v6  ;;  %v44_v51 = vld [vmem:[%s949_s6 + $0x8] sm:$0xff]  ;;  %v43_v52 = vld [vmem:[%s949_s6] sm:$0xff] }
   0xb   :  { %175 = vmatpush.msrb.mxu1 %v42_v6  ;;  %251 = vmatpush.msra.mxu2 %v50_v33  ;;  %v777_v53 = vld [vmem:[%s948_s5] ss:$0 sm:$0xff] }
   0xc   :  { %407 = vmatpush.msrb.mxu0 %v41_v7  ;;  %479 = vmatpush.msrb.mxu3 %v50_v33 }
   0xd   :  { %176 = vmatpush.msrb.mxu1 %v41_v7  ;;  %252 = vmatpush.msra.mxu2 %v49_v34 }
   0xe   :  { %408 = vmatpush.msrb.mxu0 %v40_v8  ;;  %480 = vmatpush.msrb.mxu3 %v49_v34 }
   0xf   :  { %177 = vmatpush.msrb.mxu1 %v40_v8  ;;  %253 = vmatpush.msra.mxu2 %v48_v36 }
  0x10   :  { %409 = vmatpush.msrb.mxu0 %v39_v10  ;;  %481 = vmatpush.msrb.mxu3 %v48_v36 }
  0x11   :  { %529 = vmatmul.msk.f32.gmra.mxu0 %vm65_vm0, %v55_v9  ;;  %178 = vmatpush.msrb.mxu1 %v39_v10 }
  0x12   :  { %534 = vmatmul.msk.f32.gmra.mxu1 %vm65_vm0, %v60_v11  ;;  %410 = vmatpush.msrb.mxu0 %v38_v12  ;;  %v296_v11 = vld [vmem:[%s951_s1 + $0x18] sm:$0xff] }
  0x13   :  { %179 = vmatpush.msrb.mxu1 %v38_v12  ;;  %254 = vmatpush.msra.mxu2 %v47_v39 }
  0x14   :  { %411 = vmatpush.msrb.mxu0 %v37_v13  ;;  %482 = vmatpush.msrb.mxu3 %v47_v39 }
  0x15   :  { %180 = vmatpush.msrb.mxu1 %v37_v13  ;;  %255 = vmatpush.msra.mxu2 %v46_v41 }
  0x16   :  { %412 = vmatpush.msrb.mxu0 %v36_v14  ;;  %483 = vmatpush.msrb.mxu3 %v46_v41 }
  0x17   :  { %181 = vmatpush.msrb.mxu1 %v36_v14  ;;  %256 = vmatpush.msra.mxu2 %v45_v50 }
  0x18   :  { %413 = vmatpush.msrb.mxu0 %v35_v19  ;;  %484 = vmatpush.msrb.mxu3 %v45_v50 }
  0x19   :  { %530 = vmatmul.msk.f32.gmra.mxu0 %vm65_vm0, %v56_v15  ;;  %182 = vmatpush.msrb.mxu1 %v35_v19  ;;  %v297_v15 = vld [vmem:[%s951_s1 + $0x20] sm:$0xff]  ;;  %v299_v19 = vld [vmem:[%s951_s1 + $0x30] sm:$0xff] }
  0x1a   :  { %535 = vmatmul.msk.f32.gmra.mxu1 %vm65_vm0, %v61_v16  ;;  %257 = vmatpush.msra.mxu2 %v44_v51  ;;  %v293_v16 = vld [vmem:[%s951_s1] sm:$0xff] }
  0x1b   :  { %485 = vmatpush.msrb.mxu3 %v44_v51 }
  0x1c   :  { %258 = vmatpush.msra.mxu2 %v43_v52  ;;  %555 = vmatmul.msk.f32.vlgmr.msra.gmra.mxu3 %vm65_vm0, %v296_v11 }
  0x1d   :  { %486 = vmatpush.msrb.mxu3 %v43_v52 }
  0x1e   :  { %337 = vmatpush.msrb.mxu2 %v640_v0 }
  0x20   :  { %338 = vmatpush.msrb.mxu2 %v645_v1 }
  0x21   :  { %531 = vmatmul.msk.f32.gmra.mxu0 %vm65_vm0, %v57_v17  ;;  %v298_v17 = vld [vmem:[%s951_s1 + $0x28] sm:$0xff] }
  0x22   :  { %339 = vmatpush.msrb.mxu2 %v652_v2 }
  0x24   :  { %340 = vmatpush.msrb.mxu2 %v660_v3  ;;  %556 = vmatmul.msk.f32.gmra.mxu3 %vm65_vm0, %v297_v15 }
  0x29   :  { %532 = vmatmul.msk.f32.gmra.mxu0 %vm65_vm0, %v58_v18  ;;  %v294_v18 = vld [vmem:[%s951_s1 + $0x8] sm:$0xff] }
  0x2c   :  { %557 = vmatmul.msk.f32.gmra.mxu3 %vm65_vm0, %v298_v17 }
  0x34   :  { %558 = vmatmul.msk.f32.gmra.mxu3 %vm65_vm0, %v299_v19 }
  0x86   :  { %v107_v21 = vpop.f32.mrf.mxu0 }
  0x87   :  { %v108_v22 = vadd.f32 %v728_v20, %v107_v21  ;;  %v122_v35 = vpop.f32.mrf.mxu1  ;;  %v295_v21 = vld [vmem:[%s951_s1 + $0x10] sm:$0xff] }
  0x88   :  { %v123_v42 = vadd.f32 %v728_v20, %v122_v35 }
  0x89   :  { %v131_v23 = vmax.f32 %v108_v22, 0.0  ;;  %v300_v22 = vld [vmem:[%s951_s1 + $0x38] sm:$0xff] }
  0x8a   :  { %v136_v44 = vmax.f32 %v123_v42, 0.0  ;;  %559 = vmatmul.msk.f32.gmra.mxu3 %vm65_vm0, %v300_v22 }
  0x8b   :  { %536 = vmatmul.msk.f32.vlgmr.msrb.gmra.mxu1 %vm142_vm1, %v131_v23  ;;  %v830_v23 = vld [vmem:[%s950_s7] ss:$0 sm:$0xff] }
  0x8e   :  { %v110_v24 = vpop.f32.mrf.mxu0 }
  0x8f   :  { %v111_v25 = vadd.f32 %v728_v20, %v110_v24  ;;  %v125_v43 = vpop.f32.mrf.mxu1 }
  0x90   :  { %v126_v45 = vadd.f32 %v728_v20, %v125_v43 }
  0x91   :  { %v132_v26 = vmax.f32 %v111_v25, 0.0 }
  0x92   :  { %v137_v46 = vmax.f32 %v126_v45, 0.0 }
  0x93   :  { %537 = vmatmul.msk.f32.gmra.mxu1 %vm142_vm1, %v132_v26 }
  0x96   :  { %v113_v27 = vpop.f32.mrf.mxu0 }
  0x97   :  { %v114_v28 = vadd.f32 %v728_v20, %v113_v27  ;;  %v128_v47 = vpop.f32.mrf.mxu1 }
  0x98   :  { %v129_v48 = vadd.f32 %v728_v20, %v128_v47 }
  0x99   :  { %v133_v29 = vmax.f32 %v114_v28, 0.0 }
  0x9a   :  { %v138_v49 = vmax.f32 %v129_v48, 0.0 }
  0x9b   :  { %538 = vmatmul.msk.f32.gmra.mxu1 %vm142_vm1, %v133_v29 }
  0x9e   :  { %v116_v30 = vpop.f32.mrf.mxu0 }
  0x9f   :  { %v117_v31 = vadd.f32 %v728_v20, %v116_v30  ;;  %v351_v45 = vpop.f32.mrf.mxu3 }
  0xa0   :  { %v352_v51 = vadd.f32 %v728_v20, %v351_v45 }
  0xa1   :  { %v134_v32 = vmax.f32 %v117_v31, 0.0 }
  0xa2   :  { %v369_v52 = vmax.f32 %v352_v51, 0.0 }
  0xa3   :  { %539 = vmatmul.msk.f32.gmra.mxu1 %vm142_vm1, %v134_v32 }
  0xa6   :  { %v119_v37 = vpop.f32.mrf.mxu0 }
  0xa7   :  { %v120_v38 = vadd.f32 %v728_v20, %v119_v37  ;;  %v354_v50 = vpop.f32.mrf.mxu3 }
  0xa9   :  { %v135_v40 = vmax.f32 %v120_v38, 0.0 }
  0xab   :  { %540 = vmatmul.msk.f32.gmra.mxu1 %vm142_vm1, %v135_v40 }
  0xb3   :  { %541 = vmatmul.msk.f32.gmra.mxu1 %vm142_vm1, %v136_v44 }
  0xbb   :  { %542 = vmatmul.msk.f32.gmra.mxu1 %vm142_vm1, %v137_v46 }
  0xc3   :  { %543 = vmatmul.msk.f32.gmra.mxu1 %vm142_vm1, %v138_v49 }
 0x108   :  { %v184_v54 = vpop.f32.mrf.mxu1 }
 0x109   :  { %v185_v55 = vadd.f32 %v777_v53, %v184_v54  ;;  %v355_v54 = vadd.f32 %v728_v20, %v354_v50 }
 0x10b   :  { %v208_v56 = vmax.f32 %v185_v55, 0.0  ;;  %v357_v55 = vpop.f32.mrf.mxu3 }
 0x10d   :  { %544 = vmatmul.msk.f32.vlgmr.msra.gmra.mxu2 %vm142_vm1, %v208_v56  ;;  %v370_v56 = vmax.f32 %v355_v54, 0.0 }
 0x110   :  { %v187_v57 = vpop.f32.mrf.mxu1 }
 0x111   :  { %v188_v58 = vadd.f32 %v777_v53, %v187_v57  ;;  %v358_v57 = vadd.f32 %v728_v20, %v357_v55 }
 0x113   :  { %v209_v59 = vmax.f32 %v188_v58, 0.0  ;;  %v360_v58 = vpop.f32.mrf.mxu3 }
 0x115   :  { %545 = vmatmul.msk.f32.gmra.mxu2 %vm142_vm1, %v209_v59  ;;  %v371_v59 = vmax.f32 %v358_v57, 0.0 }
 0x118   :  { %v190_v60 = vpop.f32.mrf.mxu1 }
 0x119   :  { %v191_v61 = vadd.f32 %v777_v53, %v190_v60  ;;  %v361_v60 = vadd.f32 %v728_v20, %v360_v58 }
 0x11b   :  { %v210_v62 = vmax.f32 %v191_v61, 0.0  ;;  %v372_v61 = vmax.f32 %v361_v60, 0.0 }
 0x11d   :  { %546 = vmatmul.msk.f32.gmra.mxu2 %vm142_vm1, %v210_v62  ;;  %v363_v62 = vpop.f32.mrf.mxu3 }
 0x120   :  { %v193_v63 = vpop.f32.mrf.mxu1 }
 0x121   :  { %v194_v0 = vadd.f32 %v777_v53, %v193_v63  ;;  %v364_v63 = vadd.f32 %v728_v20, %v363_v62 }
 0x123   :  { %v211_v1 = vmax.f32 %v194_v0, 0.0  ;;  %v373_v0 = vmax.f32 %v364_v63, 0.0 }
 0x125   :  { %547 = vmatmul.msk.f32.gmra.mxu2 %vm142_vm1, %v211_v1 }
 0x128   :  { %v196_v2 = vpop.f32.mrf.mxu1 }
 0x129   :  { %v197_v3 = vadd.f32 %v777_v53, %v196_v2 }
 0x12b   :  { %v212_v4 = vmax.f32 %v197_v3, 0.0 }
 0x12d   :  { %548 = vmatmul.msk.f32.gmra.mxu2 %vm142_vm1, %v212_v4 }
 0x130   :  { %v199_v5 = vpop.f32.mrf.mxu1 }
 0x131   :  { %v200_v6 = vadd.f32 %v777_v53, %v199_v5 }
 0x133   :  { %v213_v7 = vmax.f32 %v200_v6, 0.0 }
 0x135   :  { %549 = vmatmul.msk.f32.gmra.mxu2 %vm142_vm1, %v213_v7 }
 0x138   :  { %v202_v8 = vpop.f32.mrf.mxu1 }
 0x139   :  { %v203_v9 = vadd.f32 %v777_v53, %v202_v8 }
 0x13b   :  { %v214_v10 = vmax.f32 %v203_v9, 0.0 }
 0x13d   :  { %550 = vmatmul.msk.f32.gmra.mxu2 %vm142_vm1, %v214_v10 }
 0x140   :  { %v205_v12 = vpop.f32.mrf.mxu1 }
 0x141   :  { %v206_v13 = vadd.f32 %v777_v53, %v205_v12 }
 0x143   :  { %v215_v14 = vmax.f32 %v206_v13, 0.0 }
 0x145   :  { %551 = vmatmul.msk.f32.gmra.mxu2 %vm142_vm1, %v215_v14 }
 0x14d   :  { %552 = vmatmul.msk.f32.vlgmr.msrb.gmra.mxu2 %vm65_vm0, %v293_v16 }
 0x155   :  { %553 = vmatmul.msk.f32.gmra.mxu2 %vm65_vm0, %v294_v18 }
 0x15d   :  { %554 = vmatmul.msk.f32.gmra.mxu2 %vm65_vm0, %v295_v21 }
 0x190   :  { %v260_v24 = vpop.f32.mrf.mxu2 }
 0x191   :  { %v261_v25 = vadd.f32 %v830_v23, %v260_v24 }
 0x193   :  { %285 = vst.msk [vmem:[%s952_s8] sm:$0xff] %vm284_vm2, %v261_v25 }
 0x198   :  { %v263_v26 = vpop.f32.mrf.mxu2 }
 0x199   :  { %v264_v27 = vadd.f32 %v830_v23, %v263_v26 }
 0x19b   :  { %286 = vst.msk [vmem:[%s952_s8 + $0x8] sm:$0xff] %vm284_vm2, %v264_v27 }
 0x1a0   :  { %v266_v28 = vpop.f32.mrf.mxu2 }
 0x1a1   :  { %v267_v29 = vadd.f32 %v830_v23, %v266_v28 }
 0x1a3   :  { %287 = vst.msk [vmem:[%s952_s8 + $0x10] sm:$0xff] %vm284_vm2, %v267_v29 }
 0x1a8   :  { %v269_v30 = vpop.f32.mrf.mxu2 }
 0x1a9   :  { %v270_v31 = vadd.f32 %v830_v23, %v269_v30 }
 0x1ab   :  { %288 = vst.msk [vmem:[%s952_s8 + $0x18] sm:$0xff] %vm284_vm2, %v270_v31 }
 0x1b0   :  { %v272_v32 = vpop.f32.mrf.mxu2 }
 0x1b1   :  { %v273_v33 = vadd.f32 %v830_v23, %v272_v32 }
 0x1b3   :  { %289 = vst.msk [vmem:[%s952_s8 + $0x20] sm:$0xff] %vm284_vm2, %v273_v33 }
 0x1b8   :  { %v275_v34 = vpop.f32.mrf.mxu2 }
 0x1b9   :  { %v276_v35 = vadd.f32 %v830_v23, %v275_v34 }
 0x1bb   :  { %290 = vst.msk [vmem:[%s952_s8 + $0x28] sm:$0xff] %vm284_vm2, %v276_v35 }
 0x1c0   :  { %v278_v36 = vpop.f32.mrf.mxu2 }
 0x1c1   :  { %v279_v37 = vadd.f32 %v830_v23, %v278_v36 }
 0x1c3   :  { %291 = vst.msk [vmem:[%s952_s8 + $0x30] sm:$0xff] %vm284_vm2, %v279_v37 }
 0x1c8   :  { %v281_v38 = vpop.f32.mrf.mxu2 }
 0x1c9   :  { %v282_v39 = vadd.f32 %v830_v23, %v281_v38 }
 0x1cb   :  { %292 = vst.msk [vmem:[%s952_s8 + $0x38] sm:$0xff] %vm284_vm2, %v282_v39 }
 0x1d0   :  { %v342_v40 = vpop.f32.mrf.mxu2 }
 0x1d1   :  { %v343_v41 = vadd.f32 %v728_v20, %v342_v40 }
 0x1d3   :  { %v366_v42 = vmax.f32 %v343_v41, 0.0 }
 0x1d5   :  { %560 = vmatmul.msk.f32.vlgmr.msrb.gmra.mxu0 %vm142_vm1, %v366_v42 }
 0x1d8   :  { %v345_v43 = vpop.f32.mrf.mxu2 }
 0x1d9   :  { %v346_v44 = vadd.f32 %v728_v20, %v345_v43 }
 0x1db   :  { %v367_v46 = vmax.f32 %v346_v44, 0.0 }
 0x1dd   :  { %561 = vmatmul.msk.f32.gmra.mxu0 %vm142_vm1, %v367_v46 }
 0x1e0   :  { %v348_v47 = vpop.f32.mrf.mxu2 }
 0x1e1   :  { %v349_v48 = vadd.f32 %v728_v20, %v348_v47 }
 0x1e3   :  { %v368_v49 = vmax.f32 %v349_v48, 0.0 }
 0x1e5   :  { %562 = vmatmul.msk.f32.gmra.mxu0 %vm142_vm1, %v368_v49 }
 0x1ed   :  { %563 = vmatmul.msk.f32.gmra.mxu0 %vm142_vm1, %v369_v52 }
 0x1f5   :  { %564 = vmatmul.msk.f32.gmra.mxu0 %vm142_vm1, %v370_v56 }
 0x1fd   :  { %565 = vmatmul.msk.f32.gmra.mxu0 %vm142_vm1, %v371_v59 }
 0x205   :  { %566 = vmatmul.msk.f32.gmra.mxu0 %vm142_vm1, %v372_v61 }
 0x20d   :  { %567 = vmatmul.msk.f32.gmra.mxu0 %vm142_vm1, %v373_v0 }
 0x252   :  { %v415_v1 = vpop.f32.mrf.mxu0 }
 0x253   :  { %v416_v2 = vadd.f32 %v777_v53, %v415_v1 }
 0x255   :  { %v439_v3 = vmax.f32 %v416_v2, 0.0 }
 0x257   :  { %568 = vmatmul.msk.f32.vlgmr.msrb.gmra.mxu3 %vm142_vm1, %v439_v3 }
 0x25a   :  { %v418_v4 = vpop.f32.mrf.mxu0 }
 0x25b   :  { %v419_v5 = vadd.f32 %v777_v53, %v418_v4 }
 0x25d   :  { %v440_v6 = vmax.f32 %v419_v5, 0.0 }
 0x25f   :  { %569 = vmatmul.msk.f32.gmra.mxu3 %vm142_vm1, %v440_v6 }
 0x262   :  { %v421_v7 = vpop.f32.mrf.mxu0 }
 0x263   :  { %v422_v8 = vadd.f32 %v777_v53, %v421_v7 }
 0x265   :  { %v441_v9 = vmax.f32 %v422_v8, 0.0 }
 0x267   :  { %570 = vmatmul.msk.f32.gmra.mxu3 %vm142_vm1, %v441_v9 }
 0x26a   :  { %v424_v20 = vpop.f32.mrf.mxu0 }
 0x26b   :  { %v425_v10 = vadd.f32 %v777_v53, %v424_v20 }
 0x26d   :  { %v442_v11 = vmax.f32 %v425_v10, 0.0 }
 0x26f   :  { %571 = vmatmul.msk.f32.gmra.mxu3 %vm142_vm1, %v442_v11 }
 0x272   :  { %v427_v12 = vpop.f32.mrf.mxu0 }
 0x273   :  { %v428_v13 = vadd.f32 %v777_v53, %v427_v12 }
 0x275   :  { %v443_v14 = vmax.f32 %v428_v13, 0.0 }
 0x277   :  { %572 = vmatmul.msk.f32.gmra.mxu3 %vm142_vm1, %v443_v14 }
 0x27a   :  { %v430_v15 = vpop.f32.mrf.mxu0 }
 0x27b   :  { %v431_v16 = vadd.f32 %v777_v53, %v430_v15 }
 0x27d   :  { %v444_v17 = vmax.f32 %v431_v16, 0.0 }
 0x27f   :  { %573 = vmatmul.msk.f32.gmra.mxu3 %vm142_vm1, %v444_v17 }
 0x282   :  { %v433_v18 = vpop.f32.mrf.mxu0 }
 0x283   :  { %v434_v19 = vadd.f32 %v777_v53, %v433_v18 }
 0x285   :  { %v445_v21 = vmax.f32 %v434_v19, 0.0 }
 0x287   :  { %574 = vmatmul.msk.f32.gmra.mxu3 %vm142_vm1, %v445_v21 }
 0x28a   :  { %v436_v22 = vpop.f32.mrf.mxu0 }
 0x28b   :  { %v437_v24 = vadd.f32 %v777_v53, %v436_v22 }
 0x28d   :  { %v446_v25 = vmax.f32 %v437_v24, 0.0 }
 0x28f   :  { %575 = vmatmul.msk.f32.gmra.mxu3 %vm142_vm1, %v446_v25 }
 0x2da   :  { %v488_v26 = vpop.f32.mrf.mxu3 }
 0x2db   :  { %v489_v27 = vadd.f32 %v830_v23, %v488_v26 }
 0x2dd   :  { %512 = vst.msk [vmem:[%s953_s9] sm:$0xff] %vm284_vm2, %v489_v27 }
 0x2e2   :  { %v491_v28 = vpop.f32.mrf.mxu3 }
 0x2e3   :  { %v492_v29 = vadd.f32 %v830_v23, %v491_v28 }
 0x2e5   :  { %513 = vst.msk [vmem:[%s953_s9 + $0x8] sm:$0xff] %vm284_vm2, %v492_v29 }
 0x2ea   :  { %v494_v53 = vpop.f32.mrf.mxu3 }
 0x2eb   :  { %v495_v30 = vadd.f32 %v830_v23, %v494_v53 }
 0x2ed   :  { %514 = vst.msk [vmem:[%s953_s9 + $0x10] sm:$0xff] %vm284_vm2, %v495_v30 }
 0x2f2   :  { %v497_v31 = vpop.f32.mrf.mxu3 }
 0x2f3   :  { %v498_v32 = vadd.f32 %v830_v23, %v497_v31 }
 0x2f5   :  { %515 = vst.msk [vmem:[%s953_s9 + $0x18] sm:$0xff] %vm284_vm2, %v498_v32 }
 0x2fa   :  { %v500_v33 = vpop.f32.mrf.mxu3 }
 0x2fb   :  { %v501_v34 = vadd.f32 %v830_v23, %v500_v33 }
 0x2fd   :  { %516 = vst.msk [vmem:[%s953_s9 + $0x20] sm:$0xff] %vm284_vm2, %v501_v34 }
 0x302   :  { %v503_v35 = vpop.f32.mrf.mxu3 }
 0x303   :  { %v504_v36 = vadd.f32 %v830_v23, %v503_v35 }
 0x305   :  { %517 = vst.msk [vmem:[%s953_s9 + $0x28] sm:$0xff] %vm284_vm2, %v504_v36 }
 0x30a   :  { %v506_v37 = vpop.f32.mrf.mxu3 }
 0x30b   :  { %v507_v38 = vadd.f32 %v830_v23, %v506_v37 }
 0x30d   :  { %518 = vst.msk [vmem:[%s953_s9 + $0x30] sm:$0xff] %vm284_vm2, %v507_v38 }
 0x312   :  { %v509_v39 = vpop.f32.mrf.mxu3 }
 0x313   :  { %v510_v40 = vadd.f32 %v830_v23, %v509_v39 }
 0x315   :  { %519 = vst.msk [vmem:[%s953_s9 + $0x38] sm:$0xff] %vm284_vm2, %v510_v40 }

</bundles_post_ra>
